<compile_context>
chip_gen: v5e
topology: v5e:2x2
jax: 0.10.0
libtpu: 0.0.40
codegen_flags: <defaults>
</compile_context>

<pallas_src>
import functools

import jax
import jax.numpy as jnp
from jax.experimental import pallas as pl
from jax.experimental.pallas import tpu as pltpu


# ---------------------------------------------------------------------------
# Generation-aware VMEM budgeting.
# ---------------------------------------------------------------------------
def _vmem_budget():
    """Returns (per_buffer_block_bytes, vmem_limit_bytes)."""
    cap = 128 << 20
    try:
        cap = int(getattr(pltpu.get_tpu_info(), "vmem_capacity_bytes", cap))
    except Exception:          # not a TPU / query unavailable: assume 128 MiB gens
        pass
    if cap <= (64 << 20):      # v7x: 64 MiB physical VMEM per TensorCore
        return 10 << 20, 40 << 20
    return 14 << 20, 64 << 20  # v5e / v6e: 128 MiB physical VMEM


def _choose_tiles(n_rows, vocab, itemsize, per_buf_bytes):
    """(row_tile, vocab_tile): row tile is a multiple of 8; vocab tile is
    lane-dense (multiple of 128) or the full vocab."""
    rows8 = ((n_rows + 7) // 8) * 8
    full_rows = (per_buf_bytes // max(vocab * itemsize, 1)) // 8 * 8
    if full_rows >= min(rows8, 256):
        # Whole vocab as one lane-dense tile; as many rows as the budget allows.
        return max(8, min(rows8, full_rows, 1024)), vocab
    # Huge vocab: tile the vocab axis (online log-sum-exp inside the kernel).
    tn = min(rows8, 256)
    tv = (per_buf_bytes // max(tn * itemsize, 1)) // 128 * 128
    tv = max(128, tv)
    return tn, (vocab if tv >= vocab else tv)


# ---------------------------------------------------------------------------
# MLM step shared by both kernels: online LSE over vocab tiles, masked
# (ignore_index / row tail) NLL accumulated into this partition's (1,1,1) block.
# ---------------------------------------------------------------------------
def _mlm_step(n_rows, vocab, tn, tv, rpp, mask_cols,
              mlm_s_ref, mlm_l_ref, mlm_out_ref, m_sc, d_sc, t_sc):
    p = pl.program_id(0)            # partition (parallel; one per TC on v7x)
    r = pl.program_id(1)            # row tile within the partition
    v = pl.program_id(2)            # vocab tile (innermost)
    last_v = pl.num_programs(2) - 1

    @pl.when(jnp.logical_and(r == 0, v == 0))
    def _():                        # first visit of this partition's output block
        mlm_out_ref[...] = jnp.zeros_like(mlm_out_ref)

    @pl.when(v == 0)
    def _():                        # new row tile: reset online-LSE state
        m_sc[...] = jnp.full_like(m_sc, -jnp.inf)
        d_sc[...] = jnp.zeros_like(d_sc)
        t_sc[...] = jnp.zeros_like(t_sc)

    x = mlm_s_ref[...].astype(jnp.float32)                     # bf16->f32 on VPU
    lab = mlm_l_ref[...]                                       # (tn, 1) int32
    col = jax.lax.broadcasted_iota(jnp.int32, (tn, tv), 1) + v * tv
    x_valid = jnp.where(col < vocab, x, -jnp.inf) if mask_cols else x

    m_old = m_sc[...]
    m_new = jnp.maximum(m_old, jnp.max(x_valid, axis=-1, keepdims=True))
    d_sc[...] = (d_sc[...] * jnp.exp(m_old - m_new)
                 + jnp.sum(jnp.exp(x_valid - m_new), axis=-1, keepdims=True))
    t_sc[...] += jnp.sum(jnp.where(col == lab, x, 0.0), axis=-1, keepdims=True)
    m_sc[...] = m_new

    @pl.when(v == last_v)
    def _():                        # finish the row tile: masked NLL, accumulate
        lse = m_sc[...] + jnp.log(d_sc[...])
        row = jax.lax.broadcasted_iota(jnp.int32, (tn, 1), 0) + (p * rpp + r) * tn
        valid = jnp.logical_and(row < n_rows, lab != -1)        # tail + ignore_index
        loss = jnp.where(valid, lse - t_sc[...], 0.0)
        mlm_out_ref[...] += jnp.sum(loss, axis=0, keepdims=True).reshape(
            mlm_out_ref.shape)


def _criterion_kernel(n_rows, vocab, tn, tv, rpp, mask_cols, inv_nsp,
                      mlm_s_ref, mlm_l_ref, nsp_s_ref, nsp_l_ref,
                      mlm_out_ref, nsp_out_ref, m_sc, d_sc, t_sc):
    p = pl.program_id(0)
    r = pl.program_id(1)
    v = pl.program_id(2)

    @pl.when(jnp.logical_and(r == 0, v == 0))
    def _():   # tiny NSP CE, computed at the first step; only p==0 contributes
        xs = nsp_s_ref[...].astype(jnp.float32)
        labs = nsp_l_ref[...]
        m = jnp.max(xs, axis=-1, keepdims=True)
        lse = m + jnp.log(jnp.sum(jnp.exp(xs - m), axis=-1, keepdims=True))
        colz = jax.lax.broadcasted_iota(jnp.int32, xs.shape, 1)
        tgt = jnp.sum(jnp.where(colz == labs, xs, 0.0), axis=-1, keepdims=True)
        val = jnp.sum(lse - tgt, axis=0, keepdims=True) * inv_nsp
        val = jnp.where(p == 0, val, jnp.zeros_like(val))
        nsp_out_ref[...] = val.reshape(nsp_out_ref.shape)

    _mlm_step(n_rows, vocab, tn, tv, rpp, mask_cols,
              mlm_s_ref, mlm_l_ref, mlm_out_ref, m_sc, d_sc, t_sc)


def _mlm_only_kernel(n_rows, vocab, tn, tv, rpp, mask_cols,
                     mlm_s_ref, mlm_l_ref, mlm_out_ref, m_sc, d_sc, t_sc):
    _mlm_step(n_rows, vocab, tn, tv, rpp, mask_cols,
              mlm_s_ref, mlm_l_ref, mlm_out_ref, m_sc, d_sc, t_sc)


# ---------------------------------------------------------------------------
# Wrapper (argument order mirrors the torch forward).
# ---------------------------------------------------------------------------
def ernie_pretraining_criterion(prediction_scores, seq_relationship_score=None,
                                masked_lm_labels=None, next_sentence_labels=None,
                                with_nsp_loss=True, *, _row_tile=None,
                                _vocab_tile=None, _partitions=None):
    """prediction_scores: (B, S, V) or (B, mask_num, V), any float dtype (kept
    native for the HBM stream); masked_lm_labels: matching leading dims, int
    (ignore_index = -1); seq_relationship_score: (B, 2); next_sentence_labels:
    (B,) or (B, 1) int.  Returns (mlm_loss, nsp_loss) or mlm_loss."""
    vocab = prediction_scores.shape[-1]
    scores2d = prediction_scores.reshape(-1, vocab)        # native dtype, no upcast
    labels2d = masked_lm_labels.astype(jnp.int32).reshape(-1, 1)
    n_rows = scores2d.shape[0]
    itemsize = jnp.dtype(scores2d.dtype).itemsize

    per_buf, vmem_limit = _vmem_budget()
    tn, tv = _choose_tiles(n_rows, vocab, itemsize, per_buf)
    if _row_tile is not None:
        tn = _row_tile
    if _vocab_tile is not None:
        tv = _vocab_tile

    n_row_blocks = pl.cdiv(n_rows, tn)                     # no jnp.pad; tail masked in-kernel
    n_parts = min(2, n_row_blocks) if _partitions is None else _partitions
    n_parts = max(1, min(n_parts, n_row_blocks))
    rpp = pl.cdiv(n_row_blocks, n_parts)                   # row blocks per partition
    n_vocab_blocks = pl.cdiv(vocab, tv)
    mask_cols = (vocab % tv) != 0

    def _row_block(p, r):                                  # clamp overhanging blocks
        return jnp.minimum(p * rpp + r, n_row_blocks - 1)

    grid = (n_parts, rpp, n_vocab_blocks)
    mlm_spec = pl.BlockSpec((tn, tv), lambda p, r, v: (_row_block(p, r), v))
    lab_spec = pl.BlockSpec((tn, 1), lambda p, r, v: (_row_block(p, r), 0))
    part_spec = pl.BlockSpec((1, 1, 1), lambda p, r, v: (p, 0, 0))

    cparams = pltpu.CompilerParams(
        dimension_semantics=("parallel", "arbitrary", "arbitrary"),
        vmem_limit_bytes=vmem_limit)
    scratch = [pltpu.VMEM((tn, 1), jnp.float32) for _ in range(3)]  # m, denom, target
    cost = pl.CostEstimate(
        flops=5 * n_rows * vocab,
        transcendentals=n_rows * vocab,
        bytes_accessed=n_rows * vocab * itemsize + n_rows * 4 + 64)
    inv_mlm = 1.0 / float(n_rows)          # torch.mean over ALL positions (incl. -1)

    if with_nsp_loss:
        nb, nc = seq_relationship_score.shape
        nsp_l = next_sentence_labels.astype(jnp.int32).reshape(nb, 1)
        kernel = functools.partial(_criterion_kernel, n_rows, vocab, tn, tv, rpp,
                                   mask_cols, 1.0 / float(nb))
        mlm_part, nsp_part = pl.pallas_call(
            kernel,
            out_shape=(jax.ShapeDtypeStruct((n_parts, 1, 1), jnp.float32),
                       jax.ShapeDtypeStruct((n_parts, 1, 1), jnp.float32)),
            grid=grid,
            in_specs=[mlm_spec, lab_spec,
                      pl.BlockSpec((nb, nc), lambda p, r, v: (0, 0)),
                      pl.BlockSpec((nb, 1), lambda p, r, v: (0, 0))],
            out_specs=(part_spec, part_spec),
            scratch_shapes=scratch,
            compiler_params=cparams,
            cost_estimate=cost,
        )(scores2d, labels2d, seq_relationship_score, nsp_l)
        return jnp.sum(mlm_part) * inv_mlm, jnp.sum(nsp_part)

    kernel = functools.partial(_mlm_only_kernel, n_rows, vocab, tn, tv, rpp,
                               mask_cols)
    mlm_part = pl.pallas_call(
        kernel,
        out_shape=jax.ShapeDtypeStruct((n_parts, 1, 1), jnp.float32),
        grid=grid,
        in_specs=[mlm_spec, lab_spec],
        out_specs=part_spec,
        scratch_shapes=scratch,
        compiler_params=cparams,
        cost_estimate=cost,
    )(scores2d, labels2d)
    return jnp.sum(mlm_part) * inv_mlm


# ---------------------------------------------------------------------------
# Pure-JAX reference (same math, XLA path) for sanity checks.
# ---------------------------------------------------------------------------
def _ref_criterion(pred, mlm_labels, nsp_scores=None, nsp_labels=None,
                   with_nsp=True):
    vocab = pred.shape[-1]
    logits = pred.astype(jnp.float32).reshape(-1, vocab)
    lab = mlm_labels.reshape(-1)
    logp = jax.nn.log_softmax(logits, axis=-1)
    safe = jnp.clip(lab, 0, vocab - 1)
    nll = -jnp.take_along_axis(logp, safe[:, None], axis=-1)[:, 0]
    nll = jnp.where(lab == -1, 0.0, nll)
    mlm = jnp.mean(nll)
    if not with_nsp:
        return mlm
    logp2 = jax.nn.log_softmax(nsp_scores.astype(jnp.float32), axis=-1)
    nl = nsp_labels.reshape(-1)
    nll2 = -jnp.take_along_axis(logp2, nl[:, None], axis=-1)[:, 0]
    return mlm, jnp.mean(nll2)


# ---------------------------------------------------------------------------
if __name__ == "__main__":
    # ---- Case 1: bf16 logits, NSP on, single vocab tile, default tiling ----
    B, S, V = 2, 8, 128
    key = jax.random.PRNGKey(0)
    k1, k2, k3, k4, k5, k6, k7 = jax.random.split(key, 7)
    prediction_scores = jax.random.normal(k1, (B, S, V), jnp.float32).astype(jnp.bfloat16)
    masked_lm_labels = jax.random.randint(k2, (B, S, 1), 0, V, jnp.int32)
    masked_lm_labels = jnp.where(jax.random.bernoulli(k3, 0.3, (B, S, 1)),
                                 -1, masked_lm_labels)           # ignore_index = -1
    seq_relationship_score = jax.random.normal(k4, (B, 2), jnp.float32)
    next_sentence_labels = jnp.array([[0], [1]], jnp.int32)

    mlm_loss, nsp_loss = ernie_pretraining_criterion(
        prediction_scores, seq_relationship_score, masked_lm_labels,
        next_sentence_labels, with_nsp_loss=True)
    mlm_loss, nsp_loss = jax.block_until_ready((mlm_loss, nsp_loss))
    ref_mlm, ref_nsp = _ref_criterion(prediction_scores, masked_lm_labels,
                                      seq_relationship_score, next_sentence_labels,
                                      with_nsp=True)
    assert jnp.isfinite(mlm_loss) and jnp.isfinite(nsp_loss)
    assert jnp.allclose(mlm_loss, ref_mlm, atol=1e-4, rtol=1e-4), (
        float(mlm_loss), float(ref_mlm))
    assert jnp.allclose(nsp_loss, ref_nsp, atol=1e-4, rtol=1e-4), (
        float(nsp_loss), float(ref_nsp))

    # ---- Case 2: with_nsp_loss=False path ----
    mlm_only = ernie_pretraining_criterion(prediction_scores,
                                           seq_relationship_score,
                                           masked_lm_labels, with_nsp_loss=False)
    mlm_only = jax.block_until_ready(mlm_only)
    ref_only = _ref_criterion(prediction_scores, masked_lm_labels, with_nsp=False)
    assert jnp.allclose(mlm_only, ref_only, atol=1e-4, rtol=1e-4), (
        float(mlm_only), float(ref_only))

    # ---- Case 3: stress the tiling paths (row-tail mask, clamped partition
    #      blocks, multi-tile online LSE with vocab-tail mask, 2 partitions) ----
    B2, S2, V2 = 2, 9, 320
    ps2 = jax.random.normal(k5, (B2, S2, V2), jnp.float32)
    lab2 = jax.random.randint(k6, (B2, S2, 1), 0, V2, jnp.int32)
    lab2 = jnp.where(jax.random.bernoulli(k7, 0.25, (B2, S2, 1)), -1, lab2)
    nsp_s2 = jax.random.normal(jax.random.PRNGKey(1), (B2, 2), jnp.float32)
    nsp_l2 = jnp.array([[1], [0]], jnp.int32)
    mlm2, nsp2 = ernie_pretraining_criterion(
        ps2, nsp_s2, lab2, nsp_l2, with_nsp_loss=True,
        _row_tile=8, _vocab_tile=128, _partitions=2)
    mlm2, nsp2 = jax.block_until_ready((mlm2, nsp2))
    ref_mlm2, ref_nsp2 = _ref_criterion(ps2, lab2, nsp_s2, nsp_l2, with_nsp=True)
    assert jnp.allclose(mlm2, ref_mlm2, atol=1e-4, rtol=1e-4), (
        float(mlm2), float(ref_mlm2))
    assert jnp.allclose(nsp2, ref_nsp2, atol=1e-4, rtol=1e-4), (
        float(nsp2), float(ref_nsp2))

    print("KERNEL_OK")
</pallas_src>

<mosaic_0001>
module attributes {stable_mosaic.version = 11 : i64} {
  func.func @_criterion_kernel(%arg0: i32, %arg1: i32, %arg2: i32, %arg3: memref<16x128xbf16, #tpu.memory_space<vmem>>, %arg4: memref<16x1xi32, #tpu.memory_space<vmem>>, %arg5: memref<2x2xf32, #tpu.memory_space<vmem>>, %arg6: memref<2x1xi32, #tpu.memory_space<vmem>>, %arg7: memref<1x1x1xf32, #tpu.memory_space<vmem>>, %arg8: memref<1x1x1xf32, #tpu.memory_space<vmem>>, %arg9: memref<16x1xf32, #tpu.memory_space<vmem>>, %arg10: memref<16x1xf32, #tpu.memory_space<vmem>>, %arg11: memref<16x1xf32, #tpu.memory_space<vmem>>) attributes {dimension_semantics = [#tpu.dimension_semantics<parallel>, #tpu.dimension_semantics<arbitrary>, #tpu.dimension_semantics<arbitrary>], iteration_bounds = array<i64: 1, 1, 1>, scalar_prefetch = 0 : i64, scratch_operands = 3 : i64, tpu.core_type = #tpu.core_type<tc>, window_params = [{transform_indices = @transform_0, window_bounds = array<i64: 16, 128>}, {transform_indices = @transform_1, window_bounds = array<i64: 16, 1>}, {pipeline_mode = #tpu.pipeline_mode<synchronous>, transform_indices = @transform_2, window_bounds = array<i64: 2, 2>}, {pipeline_mode = #tpu.pipeline_mode<synchronous>, transform_indices = @transform_3, window_bounds = array<i64: 2, 1>}, {transform_indices = @transform_4, window_bounds = array<i64: 1, 1, 1>}, {transform_indices = @transform_5, window_bounds = array<i64: 1, 1, 1>}]} {
    %c0_i32 = arith.constant 0 : i32
    %0 = arith.cmpi eq, %arg1, %c0_i32 : i32
    %c0_i32_0 = arith.constant 0 : i32
    %1 = arith.cmpi eq, %arg2, %c0_i32_0 : i32
    %2 = arith.andi %0, %1 : i1
    %3 = arith.extui %2 : i1 to i32
    %c0_i32_1 = arith.constant 0 : i32
    %4 = arith.cmpi ne, %3, %c0_i32_1 : i32
    scf.if %4 {
      %c0_27 = arith.constant 0 : index
      %c0_28 = arith.constant 0 : index
      %48 = vector.load %arg5[%c0_27, %c0_28] : memref<2x2xf32, #tpu.memory_space<vmem>>, vector<2x2xf32>
      %c0_29 = arith.constant 0 : index
      %c0_30 = arith.constant 0 : index
      %49 = vector.load %arg6[%c0_29, %c0_30] : memref<2x1xi32, #tpu.memory_space<vmem>>, vector<2x1xi32>
      %cst_31 = arith.constant dense<0xFF800000> : vector<2xf32>
      %50 = vector.multi_reduction <maximumf>, %48, %cst_31 [1] : vector<2x2xf32> to vector<2xf32>
      %51 = vector.shape_cast %50 : vector<2xf32> to vector<2x1xf32>
      %52 = vector.broadcast %51 : vector<2x1xf32> to vector<2x2xf32>
      %53 = arith.subf %48, %52 : vector<2x2xf32>
      %54 = math.exp %53 : vector<2x2xf32>
      %cst_32 = arith.constant dense<0.000000e+00> : vector<2xf32>
      %55 = vector.multi_reduction <add>, %54, %cst_32 [1] : vector<2x2xf32> to vector<2xf32>
      %56 = vector.shape_cast %55 : vector<2xf32> to vector<2x1xf32>
      %57 = math.log %56 : vector<2x1xf32>
      %58 = arith.addf %51, %57 : vector<2x1xf32>
      %59 = tpu.iota {dimensions = array<i32: 1>} : vector<2x2xi32>
      %60 = vector.broadcast %49 : vector<2x1xi32> to vector<2x2xi32>
      %61 = arith.cmpi eq, %59, %60 : vector<2x2xi32>
      %cst_33 = arith.constant 0.000000e+00 : f32
      %62 = vector.broadcast %cst_33 : f32 to vector<2x2xf32>
      %63 = arith.select %61, %48, %62 : vector<2x2xi1>, vector<2x2xf32>
      %cst_34 = arith.constant dense<0.000000e+00> : vector<2xf32>
      %64 = vector.multi_reduction <add>, %63, %cst_34 [1] : vector<2x2xf32> to vector<2xf32>
      %65 = vector.shape_cast %64 : vector<2xf32> to vector<2x1xf32>
      %66 = arith.subf %58, %65 : vector<2x1xf32>
      %cst_35 = arith.constant dense<0.000000e+00> : vector<1xf32>
      %67 = vector.multi_reduction <add>, %66, %cst_35 [0] : vector<2x1xf32> to vector<1xf32>
      %68 = vector.shape_cast %67 : vector<1xf32> to vector<1x1xf32>
      %cst_36 = arith.constant 5.000000e-01 : f32
      %69 = vector.broadcast %cst_36 : f32 to vector<1x1xf32>
      %70 = arith.mulf %68, %69 : vector<1x1xf32>
      %c0_i32_37 = arith.constant 0 : i32
      %71 = arith.cmpi eq, %arg0, %c0_i32_37 : i32
      %cst_38 = arith.constant 0.000000e+00 : f32
      %72 = vector.broadcast %cst_38 : f32 to vector<1x1xf32>
      %73 = arith.select %71, %70, %72 : vector<1x1xf32>
      %74 = vector.shape_cast %73 : vector<1x1xf32> to vector<1x1x1xf32>
      %c0_39 = arith.constant 0 : index
      %c0_40 = arith.constant 0 : index
      %c0_41 = arith.constant 0 : index
      %75 = vector.load %arg8[%c0_39, %c0_40, %c0_41] : memref<1x1x1xf32, #tpu.memory_space<vmem>>, vector<1x1x1xf32>
      tpu.vector_store %arg8[%c0_39, %c0_40, %c0_41], %74 {strides = array<i32>} : memref<1x1x1xf32, #tpu.memory_space<vmem>>, vector<1x1x1xf32>,
    } else {
    }
    %c0_i32_2 = arith.constant 0 : i32
    %5 = arith.cmpi eq, %arg1, %c0_i32_2 : i32
    %c0_i32_3 = arith.constant 0 : i32
    %6 = arith.cmpi eq, %arg2, %c0_i32_3 : i32
    %7 = arith.andi %5, %6 : i1
    %8 = arith.extui %7 : i1 to i32
    %c0_i32_4 = arith.constant 0 : i32
    %9 = arith.cmpi ne, %8, %c0_i32_4 : i32
    scf.if %9 {
      %cst_27 = arith.constant 0.000000e+00 : f32
      %48 = vector.broadcast %cst_27 : f32 to vector<1x1x1xf32>
      %c0_28 = arith.constant 0 : index
      %c0_29 = arith.constant 0 : index
      %c0_30 = arith.constant 0 : index
      %49 = vector.load %arg7[%c0_28, %c0_29, %c0_30] : memref<1x1x1xf32, #tpu.memory_space<vmem>>, vector<1x1x1xf32>
      tpu.vector_store %arg7[%c0_28, %c0_29, %c0_30], %48 {strides = array<i32>} : memref<1x1x1xf32, #tpu.memory_space<vmem>>, vector<1x1x1xf32>,
    } else {
    }
    %c0_i32_5 = arith.constant 0 : i32
    %10 = arith.cmpi eq, %arg2, %c0_i32_5 : i32
    %11 = arith.extui %10 : i1 to i32
    %c0_i32_6 = arith.constant 0 : i32
    %12 = arith.cmpi ne, %11, %c0_i32_6 : i32
    scf.if %12 {
      %cst_27 = arith.constant 0xFF800000 : f32
      %48 = vector.broadcast %cst_27 : f32 to vector<16x1xf32>
      %c0_28 = arith.constant 0 : index
      %c0_29 = arith.constant 0 : index
      %49 = vector.load %arg9[%c0_28, %c0_29] : memref<16x1xf32, #tpu.memory_space<vmem>>, vector<16x1xf32>
      tpu.vector_store %arg9[%c0_28, %c0_29], %48 {strides = array<i32>} : memref<16x1xf32, #tpu.memory_space<vmem>>, vector<16x1xf32>,
      %cst_30 = arith.constant 0.000000e+00 : f32
      %50 = vector.broadcast %cst_30 : f32 to vector<16x1xf32>
      %c0_31 = arith.constant 0 : index
      %c0_32 = arith.constant 0 : index
      %51 = vector.load %arg10[%c0_31, %c0_32] : memref<16x1xf32, #tpu.memory_space<vmem>>, vector<16x1xf32>
      tpu.vector_store %arg10[%c0_31, %c0_32], %50 {strides = array<i32>} : memref<16x1xf32, #tpu.memory_space<vmem>>, vector<16x1xf32>,
      %cst_33 = arith.constant 0.000000e+00 : f32
      %52 = vector.broadcast %cst_33 : f32 to vector<16x1xf32>
      %c0_34 = arith.constant 0 : index
      %c0_35 = arith.constant 0 : index
      %53 = vector.load %arg11[%c0_34, %c0_35] : memref<16x1xf32, #tpu.memory_space<vmem>>, vector<16x1xf32>
      tpu.vector_store %arg11[%c0_34, %c0_35], %52 {strides = array<i32>} : memref<16x1xf32, #tpu.memory_space<vmem>>, vector<16x1xf32>,
    } else {
    }
    %c0 = arith.constant 0 : index
    %c0_7 = arith.constant 0 : index
    %13 = vector.load %arg3[%c0, %c0_7] : memref<16x128xbf16, #tpu.memory_space<vmem>>, vector<16x128xbf16>
    %14 = arith.extf %13 : vector<16x128xbf16> to vector<16x128xf32>
    %c0_8 = arith.constant 0 : index
    %c0_9 = arith.constant 0 : index
    %15 = vector.load %arg4[%c0_8, %c0_9] : memref<16x1xi32, #tpu.memory_space<vmem>>, vector<16x1xi32>
    %16 = tpu.iota {dimensions = array<i32: 1>} : vector<16x128xi32>
    %c128_i32 = arith.constant 128 : i32
    %17 = arith.muli %arg2, %c128_i32 : i32
    %18 = vector.broadcast %17 : i32 to vector<16x128xi32>
    %19 = arith.addi %16, %18 : vector<16x128xi32>
    %c0_10 = arith.constant 0 : index
    %c0_11 = arith.constant 0 : index
    %20 = vector.load %arg9[%c0_10, %c0_11] : memref<16x1xf32, #tpu.memory_space<vmem>>, vector<16x1xf32>
    %cst = arith.constant dense<0xFF800000> : vector<16xf32>
    %21 = vector.multi_reduction <maximumf>, %14, %cst [1] : vector<16x128xf32> to vector<16xf32>
    %22 = vector.shape_cast %21 : vector<16xf32> to vector<16x1xf32>
    %23 = arith.maximumf %20, %22 : vector<16x1xf32>
    %c0_12 = arith.constant 0 : index
    %c0_13 = arith.constant 0 : index
    %24 = vector.load %arg10[%c0_12, %c0_13] : memref<16x1xf32, #tpu.memory_space<vmem>>, vector<16x1xf32>
    %25 = arith.subf %20, %23 : vector<16x1xf32>
    %26 = math.exp %25 : vector<16x1xf32>
    %27 = arith.mulf %24, %26 : vector<16x1xf32>
    %28 = vector.broadcast %23 : vector<16x1xf32> to vector<16x128xf32>
    %29 = arith.subf %14, %28 : vector<16x128xf32>
    %30 = math.exp %29 : vector<16x128xf32>
    %cst_14 = arith.constant dense<0.000000e+00> : vector<16xf32>
    %31 = vector.multi_reduction <add>, %30, %cst_14 [1] : vector<16x128xf32> to vector<16xf32>
    %32 = vector.shape_cast %31 : vector<16xf32> to vector<16x1xf32>
    %33 = arith.addf %27, %32 : vector<16x1xf32>
    %c0_15 = arith.constant 0 : index
    %c0_16 = arith.constant 0 : index
    %34 = vector.load %arg10[%c0_15, %c0_16] : memref<16x1xf32, #tpu.memory_space<vmem>>, vector<16x1xf32>
    tpu.vector_store %arg10[%c0_15, %c0_16], %33 {strides = array<i32>} : memref<16x1xf32, #tpu.memory_space<vmem>>, vector<16x1xf32>,
    %c0_17 = arith.constant 0 : index
    %c0_18 = arith.constant 0 : index
    %35 = vector.load %arg11[%c0_17, %c0_18] : memref<16x1xf32, #tpu.memory_space<vmem>>, vector<16x1xf32>
    %36 = vector.broadcast %15 : vector<16x1xi32> to vector<16x128xi32>
    %37 = arith.cmpi eq, %19, %36 : vector<16x128xi32>
    %cst_19 = arith.constant 0.000000e+00 : f32
    %38 = vector.broadcast %cst_19 : f32 to vector<16x128xf32>
    %39 = arith.select %37, %14, %38 : vector<16x128xi1>, vector<16x128xf32>
    %cst_20 = arith.constant dense<0.000000e+00> : vector<16xf32>
    %40 = vector.multi_reduction <add>, %39, %cst_20 [1] : vector<16x128xf32> to vector<16xf32>
    %41 = vector.shape_cast %40 : vector<16xf32> to vector<16x1xf32>
    %42 = arith.addf %35, %41 : vector<16x1xf32>
    %c0_21 = arith.constant 0 : index
    %c0_22 = arith.constant 0 : index
    %43 = vector.load %arg11[%c0_21, %c0_22] : memref<16x1xf32, #tpu.memory_space<vmem>>, vector<16x1xf32>
    tpu.vector_store %arg11[%c0_21, %c0_22], %42 {strides = array<i32>} : memref<16x1xf32, #tpu.memory_space<vmem>>, vector<16x1xf32>,
    %c0_23 = arith.constant 0 : index
    %c0_24 = arith.constant 0 : index
    %44 = vector.load %arg9[%c0_23, %c0_24] : memref<16x1xf32, #tpu.memory_space<vmem>>, vector<16x1xf32>
    tpu.vector_store %arg9[%c0_23, %c0_24], %23 {strides = array<i32>} : memref<16x1xf32, #tpu.memory_space<vmem>>, vector<16x1xf32>,
    %c0_i32_25 = arith.constant 0 : i32
    %45 = arith.cmpi eq, %arg2, %c0_i32_25 : i32
    %46 = arith.extui %45 : i1 to i32
    %c0_i32_26 = arith.constant 0 : i32
    %47 = arith.cmpi ne, %46, %c0_i32_26 : i32
    scf.if %47 {
      %c0_27 = arith.constant 0 : index
      %c0_28 = arith.constant 0 : index
      %48 = vector.load %arg9[%c0_27, %c0_28] : memref<16x1xf32, #tpu.memory_space<vmem>>, vector<16x1xf32>
      %c0_29 = arith.constant 0 : index
      %c0_30 = arith.constant 0 : index
      %49 = vector.load %arg10[%c0_29, %c0_30] : memref<16x1xf32, #tpu.memory_space<vmem>>, vector<16x1xf32>
      %50 = math.log %49 : vector<16x1xf32>
      %51 = arith.addf %48, %50 : vector<16x1xf32>
      %52 = tpu.iota {dimensions = array<i32: 0>} : vector<16x1xi32>
      %c1_i32 = arith.constant 1 : i32
      %53 = arith.muli %arg0, %c1_i32 : i32
      %54 = arith.addi %53, %arg1 : i32
      %c16_i32 = arith.constant 16 : i32
      %55 = arith.muli %54, %c16_i32 : i32
      %56 = vector.broadcast %55 : i32 to vector<16x1xi32>
      %57 = arith.addi %52, %56 : vector<16x1xi32>
      %c16_i32_31 = arith.constant 16 : i32
      %58 = vector.broadcast %c16_i32_31 : i32 to vector<16x1xi32>
      %59 = arith.cmpi slt, %57, %58 : vector<16x1xi32>
      %c-1_i32 = arith.constant -1 : i32
      %60 = vector.broadcast %c-1_i32 : i32 to vector<16x1xi32>
      %61 = arith.cmpi ne, %15, %60 : vector<16x1xi32>
      %62 = arith.andi %59, %61 : vector<16x1xi1>
      %c0_32 = arith.constant 0 : index
      %c0_33 = arith.constant 0 : index
      %63 = vector.load %arg11[%c0_32, %c0_33] : memref<16x1xf32, #tpu.memory_space<vmem>>, vector<16x1xf32>
      %64 = arith.subf %51, %63 : vector<16x1xf32>
      %cst_34 = arith.constant 0.000000e+00 : f32
      %65 = vector.broadcast %cst_34 : f32 to vector<16x1xf32>
      %66 = arith.select %62, %64, %65 : vector<16x1xi1>, vector<16x1xf32>
      %c0_35 = arith.constant 0 : index
      %c0_36 = arith.constant 0 : index
      %c0_37 = arith.constant 0 : index
      %67 = vector.load %arg7[%c0_35, %c0_36, %c0_37] : memref<1x1x1xf32, #tpu.memory_space<vmem>>, vector<1x1x1xf32>
      %cst_38 = arith.constant dense<0.000000e+00> : vector<1xf32>
      %68 = vector.multi_reduction <add>, %66, %cst_38 [0] : vector<16x1xf32> to vector<1xf32>
      %69 = vector.shape_cast %68 : vector<1xf32> to vector<1x1xf32>
      %70 = vector.shape_cast %69 : vector<1x1xf32> to vector<1x1x1xf32>
      %71 = arith.addf %67, %70 : vector<1x1x1xf32>
      %c0_39 = arith.constant 0 : index
      %c0_40 = arith.constant 0 : index
      %c0_41 = arith.constant 0 : index
      %72 = vector.load %arg7[%c0_39, %c0_40, %c0_41] : memref<1x1x1xf32, #tpu.memory_space<vmem>>, vector<1x1x1xf32>
      tpu.vector_store %arg7[%c0_39, %c0_40, %c0_41], %71 {strides = array<i32>} : memref<1x1x1xf32, #tpu.memory_space<vmem>>, vector<1x1x1xf32>,
    } else {
    }
    return
  }
  func.func @transform_0(%arg0: i32, %arg1: i32, %arg2: i32) -> (i32, i32) {
    %c1_i32 = arith.constant 1 : i32
    %0 = arith.muli %arg0, %c1_i32 : i32
    %1 = arith.addi %0, %arg1 : i32
    %c0_i32 = arith.constant 0 : i32
    %2 = arith.minsi %1, %c0_i32 : i32
    %c0_i32_0 = arith.constant 0 : i32
    return %2, %arg2 : i32, i32
  }
  func.func @transform_1(%arg0: i32, %arg1: i32, %arg2: i32) -> (i32, i32) {
    %c1_i32 = arith.constant 1 : i32
    %0 = arith.muli %arg0, %c1_i32 : i32
    %1 = arith.addi %0, %arg1 : i32
    %c0_i32 = arith.constant 0 : i32
    %2 = arith.minsi %1, %c0_i32 : i32
    %c0_i32_0 = arith.constant 0 : i32
    %c0_i32_1 = arith.constant 0 : i32
    return %2, %c0_i32_0 : i32, i32
  }
  func.func @transform_2(%arg0: i32, %arg1: i32, %arg2: i32) -> (i32, i32) {
    %c0_i32 = arith.constant 0 : i32
    %c0_i32_0 = arith.constant 0 : i32
    %c0_i32_1 = arith.constant 0 : i32
    return %c0_i32, %c0_i32_0 : i32, i32
  }
  func.func @transform_3(%arg0: i32, %arg1: i32, %arg2: i32) -> (i32, i32) {
    %c0_i32 = arith.constant 0 : i32
    %c0_i32_0 = arith.constant 0 : i32
    %c0_i32_1 = arith.constant 0 : i32
    return %c0_i32, %c0_i32_0 : i32, i32
  }
  func.func @transform_4(%arg0: i32, %arg1: i32, %arg2: i32) -> (i32, i32, i32) {
    %c0_i32 = arith.constant 0 : i32
    %c0_i32_0 = arith.constant 0 : i32
    %c0_i32_1 = arith.constant 0 : i32
    return %arg0, %c0_i32, %c0_i32_0 : i32, i32, i32
  }
  func.func @transform_5(%arg0: i32, %arg1: i32, %arg2: i32) -> (i32, i32, i32) {
    %c0_i32 = arith.constant 0 : i32
    %c0_i32_0 = arith.constant 0 : i32
    %c0_i32_1 = arith.constant 0 : i32
    return %arg0, %c0_i32, %c0_i32_0 : i32, i32, i32
  }
}

</mosaic_0001>

<bundles_post_ra>
// kernel: tpu_custom_call.1
= control target key start
LH: loop header
LB: loop body
LE: loop exit
PB: predicated region body
PF: predicated region fallthrough
CT: control target
= control target key end

     0   :  { %11 = vsyncpa [#allocation6], 0  ;;  %s483_s0 = inlined_call_operand.vmem [shape: bf16[16,128], index: 0, kind: input, shape index: {}]   ;;  %s484_s1 = inlined_call_operand.vmem [shape: s32[16,1], index: 1, kind: input, shape index: {}]   ;;  %s485_s2 = inlined_call_operand.vmem [shape: f32[2,2], index: 2, kind: input, shape index: {}]   ;;  %s486_s3 = inlined_call_operand.vmem [shape: s32[2,1], index: 3, kind: input, shape index: {}]   ;;  %s487_s4 = inlined_call_operand.hbm [shape: f32[1,1,1], index: 4, kind: output, shape index: {0}]   ;;  %s488_s5 = inlined_call_operand.hbm [shape: f32[1,1,1], index: 5, kind: output, shape index: {1}]  }
   0x1   :  { %v311_v0 = vld [vmem:[%s483_s0] sm:$0xff]  }
   0x2   :  { %12 = vsyncpa [#allocation8], 0  ;;  %v312_v1 = vunpack.c.l.bf16 %v311_v0  ;;  %v313_v2 = vunpack.c.h.bf16 %v311_v0  ;;  %vm137_vm0 = vcmask 7168   ;;  %v390_v3 = vmov -inf   ;;  %v91_v6 = vld [vmem:[%s485_s2] sm:$0x3] }
   0x3   :  { %138 = vst.msk [vmem:[#allocation2] sm:$0xff] %vm137_vm0, %v390_v3  ;;  %v391_v4 = vmov 0   ;;  %v392_v5 = vmov 0.0   ;;  %vm93_vm1 = vcmask 9216   ;;  %v445_v8 = vld [vmem:[%s484_s1 + $0x8] sm:$0xff]  ;;  %v452_v13 = vld [vmem:[%s484_s1] sm:$0xff]  ;;  %v106_v20 = vlaneseq }
   0x4   :  { %157 = vmax.xlane.f32.xlu0 %v312_v1  ;;  %139 = vst.msk [vmem:[#allocation2 + $0x8] sm:$0xff] %vm137_vm0, %v390_v3  ;;  %319 = vset.pattern.permute.xlu1 %v391_v4  ;;  %v94_v7 = vsel %vm93_vm1, %v91_v6, -inf  ;;  %v92_v18 = vld [vmem:[%s486_s3] sm:$0x3]  ;;  %vm131_vm5 = vcmask 0   ;;  %vm117_vm6 = vcmask 1041408  }
   0x5   :  { %321 = vset.pattern.permute.xlu0 %v391_v4  ;;  %320 = vset.pattern.permute.xlu2 %v391_v4  ;;  %140 = vst.msk [vmem:[#allocation3] sm:$0xff] %vm137_vm0, %v392_v5  ;;  %v107_v21 = vand.u32 127, %v106_v20  ;;  %vm243_vm7 = vcmp.ne.s32.totalorder %v452_v13, 4294967295  ;;  %vm244_vm8 = vcmp.ne.s32.totalorder %v445_v8, 4294967295  ;;  %s393_s1 = smov [#allocation7]   ;;  %s284_s28 = sshll.u32 %s488_s5, 4  ;;  %s285_s28 = int_to_ptr.hbm [resolvable:$true] %s284_s28 }
   0x6   :  { %141 = vst.msk [vmem:[#allocation3 + $0x8] sm:$0xff] %vm137_vm0, %v392_v5  ;;  %95 = vmax.xlane.f32.xlu2 %v94_v7  ;;  %s282_s3 = sshll.u32 %s393_s1, 4  ;;  %s394_s29 = smov [#allocation5]   ;;  %s283_s3 = int_to_ptr.vmem [resolvable:$true] %s282_s3 }
   0x7   :  { %142 = vst.msk [vmem:[#allocation4] sm:$0xff] %vm137_vm0, %v392_v5  ;;  %s271_s30 = sshll.u32 %s394_s29, 4  ;;  %s273_s8 = sshll.u32 %s487_s4, 4  ;;  %s272_s30 = int_to_ptr.vmem [resolvable:$true] %s271_s30  ;;  %s274_s8 = int_to_ptr.hbm [resolvable:$true] %s273_s8 }
   0x8   :  { %143 = vst.msk [vmem:[#allocation4 + $0x8] sm:$0xff] %vm137_vm0, %v392_v5 }
   0x9   :  { %133 = vst.msk [vmem:[#allocation5] sm:$0x1] %vm131_vm5, %v392_v5 }
   0xa   :  { %v155_v9 = vld [vmem:[#allocation2] sm:$0xff] }
   0xb   :  { %v156_v14 = vld [vmem:[#allocation2 + $0x8] sm:$0xff] }
   0xc   :  { %159 = vmax.xlane.f32.xlu0 %v313_v2  ;;  %v163_v47 = vld [vmem:[#allocation3] sm:$0xff] }
   0xd   :  { %v164_v52 = vld [vmem:[#allocation3 + $0x8] sm:$0xff] }
   0xe   :  { %v198_v41 = vld [vmem:[#allocation4] sm:$0xff] }
   0xf   :  { %v199_v53 = vld [vmem:[#allocation4 + $0x8] sm:$0xff] }
  0x1e   :  { %201 = vperm.xlu2 %320, %v452_v13  }
  0x20   :  { %204 = vperm.xlu0 %321, %v445_v8  }
  0x77   :  { %v158_v10 = vpop.xlane.xlu0 %157 }
  0x78   :  { %v161_v11 = vmax.f32 %v155_v9, %v158_v10 }
  0x79   :  { %v459_v19 = vpop.xlane.xlu2 %95 }
  0x7a   :  { %v165_v12 = vsub.f32 %v155_v9, %v161_v11  ;;  %218 = vst.msk [vmem:[#allocation2] sm:$0xff] %vm137_vm0, %v161_v11  ;;  %175 = vperm.xlu1 %319, %v161_v11   ;;  %v97_v28 = vsub.f32 %v91_v6, %v459_v19 }
  0x7c   :  { %v98_v33 = vmul.f32 1.442695, %v97_v28  ;;  %v167_v44 = vmul.f32 1.442695, %v165_v12 }
  0x7f   :  { %v160_v15 = vpop.xlane.xlu0 %159 }
  0x80   :  { %v162_v16 = vmax.f32 %v156_v14, %v160_v15 }
  0x81   :  { %v202_v22 = vpop.permute.xlu2 %201  ;;  %v223_v0 = vld [vmem:[#allocation2] sm:$0xff] }
  0x82   :  { %v166_v17 = vsub.f32 %v156_v14, %v162_v16  ;;  %219 = vst.msk [vmem:[#allocation2 + $0x8] sm:$0xff] %vm137_vm0, %v162_v16  ;;  %180 = vperm.xlu1 %319, %v162_v16   ;;  %vm206_vm2 = vcmp.eq.s32.totalorder %v107_v21, %v202_v22 }
  0x83   :  { %v208_v23 = vsel %vm206_vm2, %v312_v1, 0.0 }
  0x84   :  { %210 = vadd.xlane.f32.xlu0 %v208_v23  ;;  %v169_v45 = vmul.f32 1.442695, %v166_v17 }
  0x89   :  { %v224_v12 = vld [vmem:[#allocation2 + $0x8] sm:$0xff] }
  0x8a   :  { %109 = vperm.xlu1 %319, %v92_v18  }
  0x92   :  { %v205_v32 = vpop.permute.xlu0 %204 }
  0x93   :  { %vm207_vm3 = vcmp.eq.s32.totalorder %v107_v21, %v205_v32 }
  0x94   :  { %v209_v34 = vsel %vm207_vm3, %v313_v2, 0.0 }
  0xec   :  { %v176_v24 = vpop.permute.xlu1 %175 }
  0xed   :  { %v183_v25 = vsub.f32 %v312_v1, %v176_v24 }
  0xef   :  { %v185_v26 = vmul.f32 1.442695, %v183_v25 }
  0xf1   :  { %322 = vpow2.f32 %v185_v26 }
  0xf4   :  { %v181_v27 = vpop.permute.xlu1 %180 }
  0xf5   :  { %v184_v29 = vsub.f32 %v313_v2, %v181_v27 }
  0xf7   :  { %v323_v30 = vpop.eup %322  ;;  %v187_v31 = vmul.f32 1.442695, %v184_v29  ;;  %v211_v42 = vpop.xlane.xlu0 %210 }
  0xf8   :  { %189 = vadd.xlane.f32.xlu1 %v323_v30  ;;  %v214_v43 = vadd.f32 %v211_v42, %v198_v41 }
  0xf9   :  { %324 = vpow2.f32 %v187_v31 }
  0xfa   :  { %326 = vpow2.f32 %v98_v33  ;;  %216 = vst.msk [vmem:[#allocation4] sm:$0xff] %vm137_vm0, %v214_v43  ;;  %v253_v33 = vld [vmem:[#allocation5] sm:$0x1] }
  0xfb   :  { %328 = vpow2.f32 %v167_v44 }
  0xfc   :  { %v110_v35 = vpop.permute.xlu1 %109  ;;  %330 = vpow2.f32 %v169_v45 }
  0xfd   :  { %vm111_vm4 = vcmp.eq.s32.totalorder %v107_v21, %v110_v35 }
  0xfe   :  { %v112_v38 = vsel %vm111_vm4, %v91_v6, 0.0 }
  0xff   :  { %v325_v36 = vpop.eup %324  ;;  %v113_v40 = vsel %vm93_vm1, %v112_v38, 0.0 }
 0x100   :  { %212 = vadd.xlane.f32.xlu1 %v209_v34  ;;  %191 = vadd.xlane.f32.xlu2 %v325_v36  ;;  %v327_v37 = vpop.eup %326 }
 0x101   :  { %v100_v39 = vsel %vm93_vm1, %v327_v37, 0.0  ;;  %v329_v46 = vpop.eup %328  ;;  %v247_v4 = vld [vmem:[#allocation4] sm:$0xff] }
 0x102   :  { %v171_v48 = vmul.f32 %v329_v46, %v163_v47  ;;  %v331_v51 = vpop.eup %330 }
 0x103   :  { %v172_v54 = vmul.f32 %v331_v51, %v164_v52 }
 0x108   :  { %114 = vadd.xlane.f32.xlu1 %v113_v40  ;;  %101 = vadd.xlane.f32.xlu2 %v100_v39 }
 0x16b   :  { %v190_v49 = vpop.xlane.xlu1 %189 }
 0x16c   :  { %v193_v50 = vadd.f32 %v190_v49, %v171_v48 }
 0x16e   :  { %196 = vst.msk [vmem:[#allocation3] sm:$0xff] %vm137_vm0, %v193_v50 }
 0x173   :  { %v213_v55 = vpop.xlane.xlu1 %212  ;;  %v192_v56 = vpop.xlane.xlu2 %191 }
 0x174   :  { %v215_v57 = vadd.f32 %v213_v55, %v199_v53  ;;  %v194_v58 = vadd.f32 %v192_v56, %v172_v54 }
 0x175   :  { %v225_v59 = vld [vmem:[#allocation3] sm:$0xff] }
 0x176   :  { %217 = vst.msk [vmem:[#allocation4 + $0x8] sm:$0xff] %vm137_vm0, %v215_v57  ;;  %332 = vlog2.f32 %v225_v59 }
 0x177   :  { %197 = vst.msk [vmem:[#allocation3 + $0x8] sm:$0xff] %vm137_vm0, %v194_v58 }
 0x17b   :  { %v102_v60 = vpop.xlane.xlu2 %101  ;;  %v115_v7 = vpop.xlane.xlu1 %114 }
 0x17c   :  { %v333_v61 = vpop.eup %332  ;;  %334 = vlog2.f32 %v102_v60 }
 0x17d   :  { %v228_v63 = vmul.f32 0.6931472, %v333_v61  ;;  %v248_v14 = vld [vmem:[#allocation4 + $0x8] sm:$0xff] }
 0x17e   :  { %v226_v62 = vld [vmem:[#allocation3 + $0x8] sm:$0xff] }
 0x17f   :  { %336 = vlog2.f32 %v226_v62  ;;  %v231_v2 = vadd.f32 %v228_v63, %v223_v0 }
 0x181   :  { %v249_v10 = vsub.f32 %v231_v2, %v247_v4 }
 0x182   :  { %v335_v1 = vpop.eup %334 }
 0x183   :  { %v104_v3 = vmul.f32 0.6931472, %v335_v1  ;;  %v251_v20 = vsel %vm243_vm7, %v249_v10, 0.0 }
 0x185   :  { %v337_v5 = vpop.eup %336  ;;  %v105_v6 = vadd.f32 %v104_v3, %v459_v19  ;;  %v254_v19 = vsel %vm137_vm0, %v251_v20, 0.0 }
 0x186   :  { %v230_v9 = vmul.f32 0.6931472, %v337_v5 }
 0x187   :  { %v116_v11 = vsub.f32 %v105_v6, %v115_v7 }
 0x188   :  { %v232_v15 = vadd.f32 %v230_v9, %v224_v12 }
 0x189   :  { %v118_v16 = vsel %vm117_vm6, %v116_v11, 0.0 }
 0x18a   :  { %v119_v17 = vrot.slane %v118_v16, 4  ;;  %v250_v18 = vsub.f32 %v232_v15, %v248_v14 }
 0x18c   :  { %v120_v21 = vadd.f32 %v119_v17, %v118_v16  ;;  %v252_v22 = vsel %vm244_vm8, %v250_v18, 0.0 }
 0x18d   :  { %v255_v23 = vsel %vm137_vm0, %v252_v22, 0.0 }
 0x18e   :  { %v256_v24 = vadd.f32 %v255_v23, %v254_v19  ;;  %v121_v25 = vrot.slane %v120_v21, 2 }
 0x190   :  { %v257_v26 = vrot.slane %v256_v24, 4  ;;  %v122_v13 = vadd.f32 %v121_v25, %v120_v21 }
 0x192   :  { %v258_v27 = vadd.f32 %v257_v26, %v256_v24  ;;  %v123_v28 = vrot.slane %v122_v13, 1 }
 0x194   :  { %v259_v8 = vrot.slane %v258_v27, 2  ;;  %v124_v29 = vadd.f32 %v123_v28, %v122_v13 }
 0x196   :  { %v260_v30 = vadd.f32 %v259_v8, %v258_v27  ;;  %v125_v31 = vmul.f32 0.5, %v124_v29 }
 0x198   :  { %v261_v32 = vrot.slane %v260_v30, 1  ;;  %132 = vst.msk [vmem:[#allocation7] sm:$0x1] %vm131_vm5, %v125_v31 }
 0x199   :  { %287 = dma.vmem_to_hbm [thread:$0]  %s283_s3, 16, %s285_s28, [#allocation8]  }
 0x19a   :  { %v262_v34 = vadd.f32 %v261_v32, %v260_v30 }
 0x19c   :  { %v263_v35 = vadd.f32 %v262_v34, %v253_v33 }
 0x19e   :  { %265 = vst.msk [vmem:[#allocation5] sm:$0x1] %vm131_vm5, %v263_v35 }
 0x19f   :  { %276 = dma.vmem_to_hbm [thread:$0]  %s272_s30, 16, %s274_s8, [#allocation6]  }
 0x1a0   :  { %386 = dma.done.wait [#allocation6], 16  }
 0x1a1   :  { %387 = vsyncadd [#allocation6], 4294967280 }
 0x1a2   :  { %388 = dma.done.wait [#allocation8], 16  }
 0x1a3   :  { %389 = vsyncadd [#allocation8], 4294967280 }
 0x1a4   :  { %296 = vsyncpa [#allocation6], 1 }
 0x1a5   :  { %297 = vsyncpa [#allocation8], 1 }

</bundles_post_ra>
